<compile_context>
chip_gen: v7x
topology: tpu7x:2x2x1
jax: 0.10.0
libtpu: 0.0.40
codegen_flags: <defaults>
</compile_context>

<pallas_src>
import math

import jax
import jax.numpy as jnp
import numpy as np
from jax.experimental import pallas as pl
from jax.experimental.pallas import tpu as pltpu


_ERF_P = 0.3275911
_ERF_A = (0.254829592, -0.284496736, 1.421413741, -1.453152027, 1.061405429)


def _erf(x):
    # Abramowitz & Stegun 7.1.26 (|error| <= 1.5e-7): matches PyTorch's
    # erf-exact nn.GELU() to well below f32 noise using only VPU ops + EUP exp.
    ax = jnp.abs(x)
    t = 1.0 / (1.0 + _ERF_P * ax)
    a1, a2, a3, a4, a5 = _ERF_A
    poly = t * (a1 + t * (a2 + t * (a3 + t * (a4 + t * a5))))
    pos = 1.0 - poly * jnp.exp(-(ax * ax))
    return jnp.where(x < 0.0, -pos, pos)


def _gelu_erf(x):
    return 0.5 * x * (1.0 + _erf(x * (1.0 / math.sqrt(2.0))))


def _layer_norm(v, gamma, beta, eps=1e-5):
    mu = jnp.mean(v, axis=-1, keepdims=True)
    var = jnp.mean((v - mu) * (v - mu), axis=-1, keepdims=True)
    return (v - mu) * jax.lax.rsqrt(var + eps) * gamma + beta


def _fnet_block_kernel(x_ref, mask_ref, cdsd_ref, a_ref, vecs_ref,
                       w1t_ref, b1_ref, w2t_ref, out_ref):
    bt, _, dim = x_ref.shape
    compute_dtype = w1t_ref.dtype          # bf16 (default) or f32

    # Hoist constant loads out of the per-batch loop.
    cdsd = cdsd_ref[...]                   # (D, 2D)  [C_D | S_D], f32
    a_mat = a_ref[...]                     # (S, 2S)  [C_S | -S_S], f32
    vecs = vecs_ref[...]                   # (5, D)   packed per-channel vectors
    gamma1, beta1 = vecs[0:1], vecs[1:2]
    gamma2, beta2 = vecs[2:3], vecs[3:4]
    b2 = vecs[4:5]
    w1t = w1t_ref[...]                     # (D, ED)  compute_dtype
    b1 = b1_ref[...]                       # (1, ED)  f32
    w2t = w2t_ref[...]                     # (ED, D)  compute_dtype

    for b in range(bt):                    # static unroll over the batch tile
        x = x_ref[b]                       # (S, D) f32
        m = mask_ref[b]                    # (S, 1) f32, broadcast over D below

        # Re[FFT_seq(FFT_hidden(x))] as 2 dense MXU matmuls:
        #   stage 1: x @ [C_D | S_D]          -> [xc | xs]   (S, 2D)
        #   stage 2: [C_S | -S_S] @ [xc ; xs] -> dft         (S, D)
        xcs = jnp.dot(x, cdsd, preferred_element_type=jnp.float32)
        stacked = jnp.concatenate([xcs[:, :dim], xcs[:, dim:]], axis=0)
        dft = jnp.dot(a_mat, stacked, preferred_element_type=jnp.float32)

        # Residual + LayerNorm1
        y = _layer_norm(dft * m + x, gamma1, beta1)

        # FeedForward: Linear -> GELU(erf) -> Linear (dropout = eval identity).
        # bf16 operands, f32 accumulation on the MXU.
        h = jnp.dot(y.astype(compute_dtype), w1t,
                    preferred_element_type=jnp.float32) + b1
        h = _gelu_erf(h)
        ff = jnp.dot(h.astype(compute_dtype), w2t,
                     preferred_element_type=jnp.float32) + b2

        # Residual + LayerNorm2
        out_ref[b] = _layer_norm(ff + y, gamma2, beta2)


def _pick_batch_tile(batch, seq):
    """Group batch elements per grid step so each step has enough rows to
    amortize the ~0.35us step overhead; keep >= 2 parallel grid steps (v7x has
    two TensorCores) whenever the batch is large enough to both group and split."""
    target = max(1, 64 // max(seq, 1))
    divisors = [d for d in range(1, batch + 1) if batch % d == 0]
    bt = max(d for d in divisors if d <= target)
    if batch >= 4 and batch // bt < 2:
        bt = max(d for d in divisors if batch // d >= 2)
    return bt


def prepare_fnet_params(params, seq_len, *, compute_dtype=jnp.bfloat16):
    """One-time weight prep (hoisted out of the forward): transpose + cast the
    FFN weights to the MXU operand dtype, pack the six per-channel vectors into
    one array, and build the dense DFT bases for the given sequence length."""
    ed, dim = params["w1"].shape

    d = np.arange(dim)
    ang_d = 2.0 * np.pi * np.outer(d, d) / dim
    cdsd = jnp.asarray(np.concatenate([np.cos(ang_d), np.sin(ang_d)], axis=1),
                       jnp.float32)                                   # (D, 2D)
    s = np.arange(seq_len)
    ang_s = 2.0 * np.pi * np.outer(s, s) / seq_len
    a_mat = jnp.asarray(np.concatenate([np.cos(ang_s), -np.sin(ang_s)], axis=1),
                        jnp.float32)                                  # (S, 2S)

    f32 = jnp.float32
    w1t = jnp.asarray(params["w1"], f32).T.astype(compute_dtype)      # (D, ED)
    w2t = jnp.asarray(params["w2"], f32).T.astype(compute_dtype)      # (ED, D)
    b1 = jnp.asarray(params["b1"], f32).reshape(1, ed)                # (1, ED)
    vecs = jnp.stack([jnp.asarray(params[k], f32) for k in
                      ("gamma1", "beta1", "gamma2", "beta2", "b2")])  # (5, D)
    return {"cdsd": cdsd, "a_mat": a_mat, "vecs": vecs,
            "w1t": w1t, "b1": b1, "w2t": w2t}


def fnet_block_forward(x, mask, prepared, *, batch_tile=None,
                       vmem_limit_bytes=56 * 1024 * 1024):
    """x: (B, S, D); mask: (B, S) or (B, S, 1), broadcast over D in-kernel."""
    B, S, D = x.shape
    ED = prepared["b1"].shape[1]
    bt = batch_tile if batch_tile is not None else _pick_batch_tile(B, S)
    assert B % bt == 0, (B, bt)

    x32 = x.astype(jnp.float32)
    mask32 = jnp.asarray(mask, jnp.float32).reshape(B, S, 1)   # narrow column

    batched = lambda last: pl.BlockSpec((bt, S, last), lambda i: (i, 0, 0))
    # Constant-index inputs never change across grid steps -> single-buffer.
    const = lambda shape: pl.BlockSpec(shape, lambda i: (0, 0),
                                       pipeline_mode=pl.Buffered(buffer_count=1))

    # NOTE: at FNet-base scale (S=512, D=768, ED=3072) the bf16 FFN weights +
    # f32 DFT bases are only a few MiB single-buffered and fit easily; for much
    # larger expansion factors the FFN could additionally be tiled over ED with
    # a VMEM accumulator (not needed at these sizes).
    return pl.pallas_call(
        _fnet_block_kernel,
        out_shape=jax.ShapeDtypeStruct((B, S, D), jnp.float32),
        grid=(B // bt,),
        in_specs=[
            batched(D),            # x
            batched(1),            # mask (broadcast over hidden dim in-kernel)
            const((D, 2 * D)),     # [C_D | S_D]
            const((S, 2 * S)),     # [C_S | -S_S]
            const((5, D)),         # gamma1, beta1, gamma2, beta2, b2
            const((D, ED)),        # W1^T   (compute dtype)
            const((1, ED)),        # b1
            const((ED, D)),        # W2^T   (compute dtype)
        ],
        out_specs=pl.BlockSpec((bt, S, D), lambda i: (i, 0, 0)),
        compiler_params=pltpu.CompilerParams(
            dimension_semantics=("parallel",),
            vmem_limit_bytes=vmem_limit_bytes),
    )(x32, mask32, prepared["cdsd"], prepared["a_mat"], prepared["vecs"],
      prepared["w1t"], prepared["b1"], prepared["w2t"])


def _reference(x, mask, params, eps=1e-5):
    """float64 numpy reference mirroring FNetBlock.forward in eval mode."""
    x = np.asarray(x, np.float64)
    mask = np.broadcast_to(np.asarray(mask, np.float64), x.shape)
    p = {k: np.asarray(v, np.float64) for k, v in params.items()}
    erf = np.vectorize(math.erf)

    def ln(v, g, b):
        mu = v.mean(-1, keepdims=True)
        var = ((v - mu) ** 2).mean(-1, keepdims=True)
        return (v - mu) / np.sqrt(var + eps) * g + b

    def gelu(v):  # erf-exact, matching torch.nn.GELU() default
        return 0.5 * v * (1.0 + erf(v / math.sqrt(2.0)))

    dft = np.fft.fft(np.fft.fft(x, axis=-1), axis=-2).real
    y = ln(dft * mask + x, p["gamma1"], p["beta1"])
    h = gelu(y @ p["w1"].T + p["b1"])
    ff = h @ p["w2"].T + p["b2"]
    return ln(ff + y, p["gamma2"], p["beta2"])


if __name__ == "__main__":
    B, S, D, E = 2, 8, 32, 2          # batch, seq, hidden dim, expansion factor
    ED = E * D

    key = jax.random.PRNGKey(0)
    ks = jax.random.split(key, 10)

    x = jax.random.normal(ks[0], (B, S, D), dtype=jnp.float32)
    # token keep-mask, broadcast over the hidden dim inside the kernel
    mask = (jax.random.uniform(ks[1], (B, S, 1)) > 0.2).astype(jnp.float32)

    params = {
        "w1": jax.random.normal(ks[2], (ED, D), jnp.float32) / np.sqrt(D),
        "b1": 0.02 * jax.random.normal(ks[3], (ED,), jnp.float32),
        "w2": jax.random.normal(ks[4], (D, ED), jnp.float32) / np.sqrt(ED),
        "b2": 0.02 * jax.random.normal(ks[5], (D,), jnp.float32),
        "gamma1": 1.0 + 0.1 * jax.random.normal(ks[6], (D,), jnp.float32),
        "beta1": 0.1 * jax.random.normal(ks[7], (D,), jnp.float32),
        "gamma2": 1.0 + 0.1 * jax.random.normal(ks[8], (D,), jnp.float32),
        "beta2": 0.1 * jax.random.normal(ks[9], (D,), jnp.float32),
    }

    ref = _reference(x, mask, params)

    # Production path: bf16 FFN operands on the MXU (f32 accumulation).
    prepared_bf16 = prepare_fnet_params(params, S, compute_dtype=jnp.bfloat16)
    out_bf16 = jax.block_until_ready(fnet_block_forward(x, mask, prepared_bf16))
    assert out_bf16.shape == (B, S, D), out_bf16.shape
    err_bf16 = np.max(np.abs(np.asarray(out_bf16, np.float64) - ref))
    # Looser tolerance: bf16 operand rounding (weights + activations).
    assert np.allclose(np.asarray(out_bf16, np.float64), ref,
                       atol=3e-2, rtol=3e-2), err_bf16

    # Full-f32 path: tight check against the float64 reference.
    prepared_f32 = prepare_fnet_params(params, S, compute_dtype=jnp.float32)
    out_f32 = jax.block_until_ready(fnet_block_forward(x, mask, prepared_f32))
    err_f32 = np.max(np.abs(np.asarray(out_f32, np.float64) - ref))
    assert np.allclose(np.asarray(out_f32, np.float64), ref,
                       atol=1e-3, rtol=1e-3), err_f32

    print("KERNEL_OK")
</pallas_src>

<mosaic_0001>
module attributes {stable_mosaic.version = 11 : i64} {
  func.func @_fnet_block_kernel(%arg0: i32, %arg1: memref<2x8x32xf32, #tpu.memory_space<vmem>>, %arg2: memref<2x8x1xf32, #tpu.memory_space<vmem>>, %arg3: memref<32x64xf32, #tpu.memory_space<vmem>>, %arg4: memref<8x16xf32, #tpu.memory_space<vmem>>, %arg5: memref<5x32xf32, #tpu.memory_space<vmem>>, %arg6: memref<32x64xbf16, #tpu.memory_space<vmem>>, %arg7: memref<1x64xf32, #tpu.memory_space<vmem>>, %arg8: memref<64x32xbf16, #tpu.memory_space<vmem>>, %arg9: memref<2x8x32xf32, #tpu.memory_space<vmem>>) attributes {dimension_semantics = [#tpu.dimension_semantics<parallel>], iteration_bounds = array<i64: 1>, scalar_prefetch = 0 : i64, scratch_operands = 0 : i64, tpu.core_type = #tpu.core_type<tc>, window_params = [{transform_indices = @transform_0, window_bounds = array<i64: 2, 8, 32>}, {transform_indices = @transform_1, window_bounds = array<i64: 2, 8, 1>}, {pipeline_mode = #tpu.pipeline_mode<synchronous>, transform_indices = @transform_2, window_bounds = array<i64: 32, 64>}, {pipeline_mode = #tpu.pipeline_mode<synchronous>, transform_indices = @transform_3, window_bounds = array<i64: 8, 16>}, {pipeline_mode = #tpu.pipeline_mode<synchronous>, transform_indices = @transform_4, window_bounds = array<i64: 5, 32>}, {pipeline_mode = #tpu.pipeline_mode<synchronous>, transform_indices = @transform_5, window_bounds = array<i64: 32, 64>}, {pipeline_mode = #tpu.pipeline_mode<synchronous>, transform_indices = @transform_6, window_bounds = array<i64: 1, 64>}, {pipeline_mode = #tpu.pipeline_mode<synchronous>, transform_indices = @transform_7, window_bounds = array<i64: 64, 32>}, {transform_indices = @transform_8, window_bounds = array<i64: 2, 8, 32>}]} {
    %c0 = arith.constant 0 : index
    %c0_0 = arith.constant 0 : index
    %0 = vector.load %arg3[%c0, %c0_0] : memref<32x64xf32, #tpu.memory_space<vmem>>, vector<32x64xf32>
    %c0_1 = arith.constant 0 : index
    %c0_2 = arith.constant 0 : index
    %1 = vector.load %arg4[%c0_1, %c0_2] : memref<8x16xf32, #tpu.memory_space<vmem>>, vector<8x16xf32>
    %c0_3 = arith.constant 0 : index
    %c0_4 = arith.constant 0 : index
    %2 = vector.load %arg5[%c0_3, %c0_4] : memref<5x32xf32, #tpu.memory_space<vmem>>, vector<5x32xf32>
    %3 = vector.extract_strided_slice %2 {offsets = [0, 0], sizes = [1, 32], strides = [1, 1]} : vector<5x32xf32> to vector<1x32xf32>
    %4 = vector.extract_strided_slice %2 {offsets = [1, 0], sizes = [1, 32], strides = [1, 1]} : vector<5x32xf32> to vector<1x32xf32>
    %5 = vector.extract_strided_slice %2 {offsets = [2, 0], sizes = [1, 32], strides = [1, 1]} : vector<5x32xf32> to vector<1x32xf32>
    %6 = vector.extract_strided_slice %2 {offsets = [3, 0], sizes = [1, 32], strides = [1, 1]} : vector<5x32xf32> to vector<1x32xf32>
    %7 = vector.extract_strided_slice %2 {offsets = [4, 0], sizes = [1, 32], strides = [1, 1]} : vector<5x32xf32> to vector<1x32xf32>
    %c0_5 = arith.constant 0 : index
    %c0_6 = arith.constant 0 : index
    %8 = vector.load %arg6[%c0_5, %c0_6] : memref<32x64xbf16, #tpu.memory_space<vmem>>, vector<32x64xbf16>
    %c0_7 = arith.constant 0 : index
    %c0_8 = arith.constant 0 : index
    %9 = vector.load %arg7[%c0_7, %c0_8] : memref<1x64xf32, #tpu.memory_space<vmem>>, vector<1x64xf32>
    %c0_9 = arith.constant 0 : index
    %c0_10 = arith.constant 0 : index
    %10 = vector.load %arg8[%c0_9, %c0_10] : memref<64x32xbf16, #tpu.memory_space<vmem>>, vector<64x32xbf16>
    %c0_11 = arith.constant 0 : index
    %c0_12 = arith.constant 0 : index
    %c0_13 = arith.constant 0 : index
    %11 = vector.load %arg1[%c0_11, %c0_12, %c0_13] : memref<2x8x32xf32, #tpu.memory_space<vmem>>, vector<1x8x32xf32>
    %12 = vector.shape_cast %11 : vector<1x8x32xf32> to vector<8x32xf32>
    %c0_14 = arith.constant 0 : index
    %c0_15 = arith.constant 0 : index
    %c0_16 = arith.constant 0 : index
    %13 = vector.load %arg2[%c0_14, %c0_15, %c0_16] : memref<2x8x1xf32, #tpu.memory_space<vmem>>, vector<1x8x1xf32>
    %14 = vector.shape_cast %13 : vector<1x8x1xf32> to vector<8x1xf32>
    %cst = arith.constant dense<0.000000e+00> : vector<8x64xf32>
    %15 = tpu.matmul %12, %0, %cst {dimension_numbers = #tpu.dot_dimension_numbers<[1], [0], [0], [1], [0, 0, 1, 1], [], []>} : vector<8x32xf32>, vector<32x64xf32>, vector<8x64xf32> -> vector<8x64xf32>
    %16 = vector.extract_strided_slice %15 {offsets = [0, 0], sizes = [8, 32], strides = [1, 1]} : vector<8x64xf32> to vector<8x32xf32>
    %17 = vector.extract_strided_slice %15 {offsets = [0, 32], sizes = [8, 32], strides = [1, 1]} : vector<8x64xf32> to vector<8x32xf32>
    %18 = tpu.concatenate %16, %17 in 0 : vector<8x32xf32>, vector<8x32xf32> -> vector<16x32xf32>
    %cst_17 = arith.constant dense<0.000000e+00> : vector<8x32xf32>
    %19 = tpu.matmul %1, %18, %cst_17 {dimension_numbers = #tpu.dot_dimension_numbers<[1], [0], [0], [1], [0, 0, 1, 1], [], []>} : vector<8x16xf32>, vector<16x32xf32>, vector<8x32xf32> -> vector<8x32xf32>
    %20 = vector.broadcast %14 : vector<8x1xf32> to vector<8x32xf32>
    %21 = arith.mulf %19, %20 : vector<8x32xf32>
    %22 = arith.addf %21, %12 : vector<8x32xf32>
    %cst_18 = arith.constant dense<0.000000e+00> : vector<8xf32>
    %23 = vector.multi_reduction <add>, %22, %cst_18 [1] : vector<8x32xf32> to vector<8xf32>
    %24 = vector.shape_cast %23 : vector<8xf32> to vector<8x1xf32>
    %cst_19 = arith.constant 3.200000e+01 : f32
    %25 = vector.broadcast %cst_19 : f32 to vector<8x1xf32>
    %26 = arith.divf %24, %25 : vector<8x1xf32>
    %27 = vector.broadcast %26 : vector<8x1xf32> to vector<8x32xf32>
    %28 = arith.subf %22, %27 : vector<8x32xf32>
    %29 = vector.broadcast %26 : vector<8x1xf32> to vector<8x32xf32>
    %30 = arith.subf %22, %29 : vector<8x32xf32>
    %31 = arith.mulf %28, %30 : vector<8x32xf32>
    %cst_20 = arith.constant dense<0.000000e+00> : vector<8xf32>
    %32 = vector.multi_reduction <add>, %31, %cst_20 [1] : vector<8x32xf32> to vector<8xf32>
    %33 = vector.shape_cast %32 : vector<8xf32> to vector<8x1xf32>
    %cst_21 = arith.constant 3.200000e+01 : f32
    %34 = vector.broadcast %cst_21 : f32 to vector<8x1xf32>
    %35 = arith.divf %33, %34 : vector<8x1xf32>
    %36 = vector.broadcast %26 : vector<8x1xf32> to vector<8x32xf32>
    %37 = arith.subf %22, %36 : vector<8x32xf32>
    %cst_22 = arith.constant 9.99999974E-6 : f32
    %38 = vector.broadcast %cst_22 : f32 to vector<8x1xf32>
    %39 = arith.addf %35, %38 : vector<8x1xf32>
    %40 = math.rsqrt %39 : vector<8x1xf32>
    %41 = vector.broadcast %40 : vector<8x1xf32> to vector<8x32xf32>
    %42 = arith.mulf %37, %41 : vector<8x32xf32>
    %43 = vector.broadcast %3 : vector<1x32xf32> to vector<8x32xf32>
    %44 = arith.mulf %42, %43 : vector<8x32xf32>
    %45 = vector.broadcast %4 : vector<1x32xf32> to vector<8x32xf32>
    %46 = arith.addf %44, %45 : vector<8x32xf32>
    %47 = arith.truncf %46 : vector<8x32xf32> to vector<8x32xbf16>
    %cst_23 = arith.constant dense<0.000000e+00> : vector<8x64xf32>
    %48 = tpu.matmul %47, %8, %cst_23 {dimension_numbers = #tpu.dot_dimension_numbers<[1], [0], [0], [1], [0, 0, 1, 1], [], []>} : vector<8x32xbf16>, vector<32x64xbf16>, vector<8x64xf32> -> vector<8x64xf32>
    %49 = vector.broadcast %9 : vector<1x64xf32> to vector<8x64xf32>
    %50 = arith.addf %48, %49 : vector<8x64xf32>
    %cst_24 = arith.constant 5.000000e-01 : f32
    %51 = vector.broadcast %cst_24 : f32 to vector<8x64xf32>
    %52 = arith.mulf %51, %50 : vector<8x64xf32>
    %cst_25 = arith.constant 0.707106769 : f32
    %53 = vector.broadcast %cst_25 : f32 to vector<8x64xf32>
    %54 = arith.mulf %50, %53 : vector<8x64xf32>
    %55 = math.absf %54 : vector<8x64xf32>
    %cst_26 = arith.constant 0.327591091 : f32
    %56 = vector.broadcast %cst_26 : f32 to vector<8x64xf32>
    %57 = arith.mulf %56, %55 : vector<8x64xf32>
    %cst_27 = arith.constant 1.000000e+00 : f32
    %58 = vector.broadcast %cst_27 : f32 to vector<8x64xf32>
    %59 = arith.addf %58, %57 : vector<8x64xf32>
    %cst_28 = arith.constant 1.000000e+00 : f32
    %60 = vector.broadcast %cst_28 : f32 to vector<8x64xf32>
    %61 = arith.divf %60, %59 : vector<8x64xf32>
    %cst_29 = arith.constant 1.06140542 : f32
    %62 = vector.broadcast %cst_29 : f32 to vector<8x64xf32>
    %63 = arith.mulf %61, %62 : vector<8x64xf32>
    %cst_30 = arith.constant -1.45315206 : f32
    %64 = vector.broadcast %cst_30 : f32 to vector<8x64xf32>
    %65 = arith.addf %64, %63 : vector<8x64xf32>
    %66 = arith.mulf %61, %65 : vector<8x64xf32>
    %cst_31 = arith.constant 1.42141378 : f32
    %67 = vector.broadcast %cst_31 : f32 to vector<8x64xf32>
    %68 = arith.addf %67, %66 : vector<8x64xf32>
    %69 = arith.mulf %61, %68 : vector<8x64xf32>
    %cst_32 = arith.constant -0.284496725 : f32
    %70 = vector.broadcast %cst_32 : f32 to vector<8x64xf32>
    %71 = arith.addf %70, %69 : vector<8x64xf32>
    %72 = arith.mulf %61, %71 : vector<8x64xf32>
    %cst_33 = arith.constant 0.254829586 : f32
    %73 = vector.broadcast %cst_33 : f32 to vector<8x64xf32>
    %74 = arith.addf %73, %72 : vector<8x64xf32>
    %75 = arith.mulf %61, %74 : vector<8x64xf32>
    %76 = arith.mulf %55, %55 : vector<8x64xf32>
    %cst_34 = arith.constant 0.000000e+00 : f32
    %77 = vector.broadcast %cst_34 : f32 to vector<8x64xf32>
    %78 = arith.subf %77, %76 : vector<8x64xf32>
    %79 = math.exp %78 : vector<8x64xf32>
    %80 = arith.mulf %75, %79 : vector<8x64xf32>
    %cst_35 = arith.constant 1.000000e+00 : f32
    %81 = vector.broadcast %cst_35 : f32 to vector<8x64xf32>
    %82 = arith.subf %81, %80 : vector<8x64xf32>
    %cst_36 = arith.constant 0.000000e+00 : f32
    %83 = vector.broadcast %cst_36 : f32 to vector<8x64xf32>
    %84 = arith.cmpf olt, %54, %83 : vector<8x64xf32>
    %cst_37 = arith.constant 0.000000e+00 : f32
    %85 = vector.broadcast %cst_37 : f32 to vector<8x64xf32>
    %86 = arith.subf %85, %82 : vector<8x64xf32>
    %87 = arith.select %84, %86, %82 : vector<8x64xi1>, vector<8x64xf32>
    %cst_38 = arith.constant 1.000000e+00 : f32
    %88 = vector.broadcast %cst_38 : f32 to vector<8x64xf32>
    %89 = arith.addf %88, %87 : vector<8x64xf32>
    %90 = arith.mulf %52, %89 : vector<8x64xf32>
    %91 = arith.truncf %90 : vector<8x64xf32> to vector<8x64xbf16>
    %cst_39 = arith.constant dense<0.000000e+00> : vector<8x32xf32>
    %92 = tpu.matmul %91, %10, %cst_39 {dimension_numbers = #tpu.dot_dimension_numbers<[1], [0], [0], [1], [0, 0, 1, 1], [], []>} : vector<8x64xbf16>, vector<64x32xbf16>, vector<8x32xf32> -> vector<8x32xf32>
    %93 = vector.broadcast %7 : vector<1x32xf32> to vector<8x32xf32>
    %94 = arith.addf %92, %93 : vector<8x32xf32>
    %95 = arith.addf %94, %46 : vector<8x32xf32>
    %cst_40 = arith.constant dense<0.000000e+00> : vector<8xf32>
    %96 = vector.multi_reduction <add>, %95, %cst_40 [1] : vector<8x32xf32> to vector<8xf32>
    %97 = vector.shape_cast %96 : vector<8xf32> to vector<8x1xf32>
    %cst_41 = arith.constant 3.200000e+01 : f32
    %98 = vector.broadcast %cst_41 : f32 to vector<8x1xf32>
    %99 = arith.divf %97, %98 : vector<8x1xf32>
    %100 = vector.broadcast %99 : vector<8x1xf32> to vector<8x32xf32>
    %101 = arith.subf %95, %100 : vector<8x32xf32>
    %102 = vector.broadcast %99 : vector<8x1xf32> to vector<8x32xf32>
    %103 = arith.subf %95, %102 : vector<8x32xf32>
    %104 = arith.mulf %101, %103 : vector<8x32xf32>
    %cst_42 = arith.constant dense<0.000000e+00> : vector<8xf32>
    %105 = vector.multi_reduction <add>, %104, %cst_42 [1] : vector<8x32xf32> to vector<8xf32>
    %106 = vector.shape_cast %105 : vector<8xf32> to vector<8x1xf32>
    %cst_43 = arith.constant 3.200000e+01 : f32
    %107 = vector.broadcast %cst_43 : f32 to vector<8x1xf32>
    %108 = arith.divf %106, %107 : vector<8x1xf32>
    %109 = vector.broadcast %99 : vector<8x1xf32> to vector<8x32xf32>
    %110 = arith.subf %95, %109 : vector<8x32xf32>
    %cst_44 = arith.constant 9.99999974E-6 : f32
    %111 = vector.broadcast %cst_44 : f32 to vector<8x1xf32>
    %112 = arith.addf %108, %111 : vector<8x1xf32>
    %113 = math.rsqrt %112 : vector<8x1xf32>
    %114 = vector.broadcast %113 : vector<8x1xf32> to vector<8x32xf32>
    %115 = arith.mulf %110, %114 : vector<8x32xf32>
    %116 = vector.broadcast %5 : vector<1x32xf32> to vector<8x32xf32>
    %117 = arith.mulf %115, %116 : vector<8x32xf32>
    %118 = vector.broadcast %6 : vector<1x32xf32> to vector<8x32xf32>
    %119 = arith.addf %117, %118 : vector<8x32xf32>
    %c0_45 = arith.constant 0 : index
    %c0_46 = arith.constant 0 : index
    %c0_47 = arith.constant 0 : index
    %120 = vector.load %arg9[%c0_45, %c0_46, %c0_47] : memref<2x8x32xf32, #tpu.memory_space<vmem>>, vector<1x8x32xf32>
    %121 = vector.shape_cast %120 : vector<1x8x32xf32> to vector<8x32xf32>
    %122 = vector.shape_cast %119 : vector<8x32xf32> to vector<1x8x32xf32>
    tpu.vector_store %arg9[%c0_45, %c0_46, %c0_47], %122 {strides = array<i32>} : memref<2x8x32xf32, #tpu.memory_space<vmem>>, vector<1x8x32xf32>,
    %c1 = arith.constant 1 : index
    %c0_48 = arith.constant 0 : index
    %c0_49 = arith.constant 0 : index
    %123 = vector.load %arg1[%c1, %c0_48, %c0_49] : memref<2x8x32xf32, #tpu.memory_space<vmem>>, vector<1x8x32xf32>
    %124 = vector.shape_cast %123 : vector<1x8x32xf32> to vector<8x32xf32>
    %c1_50 = arith.constant 1 : index
    %c0_51 = arith.constant 0 : index
    %c0_52 = arith.constant 0 : index
    %125 = vector.load %arg2[%c1_50, %c0_51, %c0_52] : memref<2x8x1xf32, #tpu.memory_space<vmem>>, vector<1x8x1xf32>
    %126 = vector.shape_cast %125 : vector<1x8x1xf32> to vector<8x1xf32>
    %cst_53 = arith.constant dense<0.000000e+00> : vector<8x64xf32>
    %127 = tpu.matmul %124, %0, %cst_53 {dimension_numbers = #tpu.dot_dimension_numbers<[1], [0], [0], [1], [0, 0, 1, 1], [], []>} : vector<8x32xf32>, vector<32x64xf32>, vector<8x64xf32> -> vector<8x64xf32>
    %128 = vector.extract_strided_slice %127 {offsets = [0, 0], sizes = [8, 32], strides = [1, 1]} : vector<8x64xf32> to vector<8x32xf32>
    %129 = vector.extract_strided_slice %127 {offsets = [0, 32], sizes = [8, 32], strides = [1, 1]} : vector<8x64xf32> to vector<8x32xf32>
    %130 = tpu.concatenate %128, %129 in 0 : vector<8x32xf32>, vector<8x32xf32> -> vector<16x32xf32>
    %cst_54 = arith.constant dense<0.000000e+00> : vector<8x32xf32>
    %131 = tpu.matmul %1, %130, %cst_54 {dimension_numbers = #tpu.dot_dimension_numbers<[1], [0], [0], [1], [0, 0, 1, 1], [], []>} : vector<8x16xf32>, vector<16x32xf32>, vector<8x32xf32> -> vector<8x32xf32>
    %132 = vector.broadcast %126 : vector<8x1xf32> to vector<8x32xf32>
    %133 = arith.mulf %131, %132 : vector<8x32xf32>
    %134 = arith.addf %133, %124 : vector<8x32xf32>
    %cst_55 = arith.constant dense<0.000000e+00> : vector<8xf32>
    %135 = vector.multi_reduction <add>, %134, %cst_55 [1] : vector<8x32xf32> to vector<8xf32>
    %136 = vector.shape_cast %135 : vector<8xf32> to vector<8x1xf32>
    %cst_56 = arith.constant 3.200000e+01 : f32
    %137 = vector.broadcast %cst_56 : f32 to vector<8x1xf32>
    %138 = arith.divf %136, %137 : vector<8x1xf32>
    %139 = vector.broadcast %138 : vector<8x1xf32> to vector<8x32xf32>
    %140 = arith.subf %134, %139 : vector<8x32xf32>
    %141 = vector.broadcast %138 : vector<8x1xf32> to vector<8x32xf32>
    %142 = arith.subf %134, %141 : vector<8x32xf32>
    %143 = arith.mulf %140, %142 : vector<8x32xf32>
    %cst_57 = arith.constant dense<0.000000e+00> : vector<8xf32>
    %144 = vector.multi_reduction <add>, %143, %cst_57 [1] : vector<8x32xf32> to vector<8xf32>
    %145 = vector.shape_cast %144 : vector<8xf32> to vector<8x1xf32>
    %cst_58 = arith.constant 3.200000e+01 : f32
    %146 = vector.broadcast %cst_58 : f32 to vector<8x1xf32>
    %147 = arith.divf %145, %146 : vector<8x1xf32>
    %148 = vector.broadcast %138 : vector<8x1xf32> to vector<8x32xf32>
    %149 = arith.subf %134, %148 : vector<8x32xf32>
    %cst_59 = arith.constant 9.99999974E-6 : f32
    %150 = vector.broadcast %cst_59 : f32 to vector<8x1xf32>
    %151 = arith.addf %147, %150 : vector<8x1xf32>
    %152 = math.rsqrt %151 : vector<8x1xf32>
    %153 = vector.broadcast %152 : vector<8x1xf32> to vector<8x32xf32>
    %154 = arith.mulf %149, %153 : vector<8x32xf32>
    %155 = vector.broadcast %3 : vector<1x32xf32> to vector<8x32xf32>
    %156 = arith.mulf %154, %155 : vector<8x32xf32>
    %157 = vector.broadcast %4 : vector<1x32xf32> to vector<8x32xf32>
    %158 = arith.addf %156, %157 : vector<8x32xf32>
    %159 = arith.truncf %158 : vector<8x32xf32> to vector<8x32xbf16>
    %cst_60 = arith.constant dense<0.000000e+00> : vector<8x64xf32>
    %160 = tpu.matmul %159, %8, %cst_60 {dimension_numbers = #tpu.dot_dimension_numbers<[1], [0], [0], [1], [0, 0, 1, 1], [], []>} : vector<8x32xbf16>, vector<32x64xbf16>, vector<8x64xf32> -> vector<8x64xf32>
    %161 = vector.broadcast %9 : vector<1x64xf32> to vector<8x64xf32>
    %162 = arith.addf %160, %161 : vector<8x64xf32>
    %cst_61 = arith.constant 5.000000e-01 : f32
    %163 = vector.broadcast %cst_61 : f32 to vector<8x64xf32>
    %164 = arith.mulf %163, %162 : vector<8x64xf32>
    %cst_62 = arith.constant 0.707106769 : f32
    %165 = vector.broadcast %cst_62 : f32 to vector<8x64xf32>
    %166 = arith.mulf %162, %165 : vector<8x64xf32>
    %167 = math.absf %166 : vector<8x64xf32>
    %cst_63 = arith.constant 0.327591091 : f32
    %168 = vector.broadcast %cst_63 : f32 to vector<8x64xf32>
    %169 = arith.mulf %168, %167 : vector<8x64xf32>
    %cst_64 = arith.constant 1.000000e+00 : f32
    %170 = vector.broadcast %cst_64 : f32 to vector<8x64xf32>
    %171 = arith.addf %170, %169 : vector<8x64xf32>
    %cst_65 = arith.constant 1.000000e+00 : f32
    %172 = vector.broadcast %cst_65 : f32 to vector<8x64xf32>
    %173 = arith.divf %172, %171 : vector<8x64xf32>
    %cst_66 = arith.constant 1.06140542 : f32
    %174 = vector.broadcast %cst_66 : f32 to vector<8x64xf32>
    %175 = arith.mulf %173, %174 : vector<8x64xf32>
    %cst_67 = arith.constant -1.45315206 : f32
    %176 = vector.broadcast %cst_67 : f32 to vector<8x64xf32>
    %177 = arith.addf %176, %175 : vector<8x64xf32>
    %178 = arith.mulf %173, %177 : vector<8x64xf32>
    %cst_68 = arith.constant 1.42141378 : f32
    %179 = vector.broadcast %cst_68 : f32 to vector<8x64xf32>
    %180 = arith.addf %179, %178 : vector<8x64xf32>
    %181 = arith.mulf %173, %180 : vector<8x64xf32>
    %cst_69 = arith.constant -0.284496725 : f32
    %182 = vector.broadcast %cst_69 : f32 to vector<8x64xf32>
    %183 = arith.addf %182, %181 : vector<8x64xf32>
    %184 = arith.mulf %173, %183 : vector<8x64xf32>
    %cst_70 = arith.constant 0.254829586 : f32
    %185 = vector.broadcast %cst_70 : f32 to vector<8x64xf32>
    %186 = arith.addf %185, %184 : vector<8x64xf32>
    %187 = arith.mulf %173, %186 : vector<8x64xf32>
    %188 = arith.mulf %167, %167 : vector<8x64xf32>
    %cst_71 = arith.constant 0.000000e+00 : f32
    %189 = vector.broadcast %cst_71 : f32 to vector<8x64xf32>
    %190 = arith.subf %189, %188 : vector<8x64xf32>
    %191 = math.exp %190 : vector<8x64xf32>
    %192 = arith.mulf %187, %191 : vector<8x64xf32>
    %cst_72 = arith.constant 1.000000e+00 : f32
    %193 = vector.broadcast %cst_72 : f32 to vector<8x64xf32>
    %194 = arith.subf %193, %192 : vector<8x64xf32>
    %cst_73 = arith.constant 0.000000e+00 : f32
    %195 = vector.broadcast %cst_73 : f32 to vector<8x64xf32>
    %196 = arith.cmpf olt, %166, %195 : vector<8x64xf32>
    %cst_74 = arith.constant 0.000000e+00 : f32
    %197 = vector.broadcast %cst_74 : f32 to vector<8x64xf32>
    %198 = arith.subf %197, %194 : vector<8x64xf32>
    %199 = arith.select %196, %198, %194 : vector<8x64xi1>, vector<8x64xf32>
    %cst_75 = arith.constant 1.000000e+00 : f32
    %200 = vector.broadcast %cst_75 : f32 to vector<8x64xf32>
    %201 = arith.addf %200, %199 : vector<8x64xf32>
    %202 = arith.mulf %164, %201 : vector<8x64xf32>
    %203 = arith.truncf %202 : vector<8x64xf32> to vector<8x64xbf16>
    %cst_76 = arith.constant dense<0.000000e+00> : vector<8x32xf32>
    %204 = tpu.matmul %203, %10, %cst_76 {dimension_numbers = #tpu.dot_dimension_numbers<[1], [0], [0], [1], [0, 0, 1, 1], [], []>} : vector<8x64xbf16>, vector<64x32xbf16>, vector<8x32xf32> -> vector<8x32xf32>
    %205 = vector.broadcast %7 : vector<1x32xf32> to vector<8x32xf32>
    %206 = arith.addf %204, %205 : vector<8x32xf32>
    %207 = arith.addf %206, %158 : vector<8x32xf32>
    %cst_77 = arith.constant dense<0.000000e+00> : vector<8xf32>
    %208 = vector.multi_reduction <add>, %207, %cst_77 [1] : vector<8x32xf32> to vector<8xf32>
    %209 = vector.shape_cast %208 : vector<8xf32> to vector<8x1xf32>
    %cst_78 = arith.constant 3.200000e+01 : f32
    %210 = vector.broadcast %cst_78 : f32 to vector<8x1xf32>
    %211 = arith.divf %209, %210 : vector<8x1xf32>
    %212 = vector.broadcast %211 : vector<8x1xf32> to vector<8x32xf32>
    %213 = arith.subf %207, %212 : vector<8x32xf32>
    %214 = vector.broadcast %211 : vector<8x1xf32> to vector<8x32xf32>
    %215 = arith.subf %207, %214 : vector<8x32xf32>
    %216 = arith.mulf %213, %215 : vector<8x32xf32>
    %cst_79 = arith.constant dense<0.000000e+00> : vector<8xf32>
    %217 = vector.multi_reduction <add>, %216, %cst_79 [1] : vector<8x32xf32> to vector<8xf32>
    %218 = vector.shape_cast %217 : vector<8xf32> to vector<8x1xf32>
    %cst_80 = arith.constant 3.200000e+01 : f32
    %219 = vector.broadcast %cst_80 : f32 to vector<8x1xf32>
    %220 = arith.divf %218, %219 : vector<8x1xf32>
    %221 = vector.broadcast %211 : vector<8x1xf32> to vector<8x32xf32>
    %222 = arith.subf %207, %221 : vector<8x32xf32>
    %cst_81 = arith.constant 9.99999974E-6 : f32
    %223 = vector.broadcast %cst_81 : f32 to vector<8x1xf32>
    %224 = arith.addf %220, %223 : vector<8x1xf32>
    %225 = math.rsqrt %224 : vector<8x1xf32>
    %226 = vector.broadcast %225 : vector<8x1xf32> to vector<8x32xf32>
    %227 = arith.mulf %222, %226 : vector<8x32xf32>
    %228 = vector.broadcast %5 : vector<1x32xf32> to vector<8x32xf32>
    %229 = arith.mulf %227, %228 : vector<8x32xf32>
    %230 = vector.broadcast %6 : vector<1x32xf32> to vector<8x32xf32>
    %231 = arith.addf %229, %230 : vector<8x32xf32>
    %c1_82 = arith.constant 1 : index
    %c0_83 = arith.constant 0 : index
    %c0_84 = arith.constant 0 : index
    %232 = vector.load %arg9[%c1_82, %c0_83, %c0_84] : memref<2x8x32xf32, #tpu.memory_space<vmem>>, vector<1x8x32xf32>
    %233 = vector.shape_cast %232 : vector<1x8x32xf32> to vector<8x32xf32>
    %234 = vector.shape_cast %231 : vector<8x32xf32> to vector<1x8x32xf32>
    tpu.vector_store %arg9[%c1_82, %c0_83, %c0_84], %234 {strides = array<i32>} : memref<2x8x32xf32, #tpu.memory_space<vmem>>, vector<1x8x32xf32>,
    return
  }
  func.func @transform_0(%arg0: i32) -> (i32, i32, i32) {
    %c0_i32 = arith.constant 0 : i32
    %c0_i32_0 = arith.constant 0 : i32
    %c0_i32_1 = arith.constant 0 : i32
    return %arg0, %c0_i32, %c0_i32_0 : i32, i32, i32
  }
  func.func @transform_1(%arg0: i32) -> (i32, i32, i32) {
    %c0_i32 = arith.constant 0 : i32
    %c0_i32_0 = arith.constant 0 : i32
    %c0_i32_1 = arith.constant 0 : i32
    return %arg0, %c0_i32, %c0_i32_0 : i32, i32, i32
  }
  func.func @transform_2(%arg0: i32) -> (i32, i32) {
    %c0_i32 = arith.constant 0 : i32
    %c0_i32_0 = arith.constant 0 : i32
    %c0_i32_1 = arith.constant 0 : i32
    return %c0_i32, %c0_i32_0 : i32, i32
  }
  func.func @transform_3(%arg0: i32) -> (i32, i32) {
    %c0_i32 = arith.constant 0 : i32
    %c0_i32_0 = arith.constant 0 : i32
    %c0_i32_1 = arith.constant 0 : i32
    return %c0_i32, %c0_i32_0 : i32, i32
  }
  func.func @transform_4(%arg0: i32) -> (i32, i32) {
    %c0_i32 = arith.constant 0 : i32
    %c0_i32_0 = arith.constant 0 : i32
    %c0_i32_1 = arith.constant 0 : i32
    return %c0_i32, %c0_i32_0 : i32, i32
  }
  func.func @transform_5(%arg0: i32) -> (i32, i32) {
    %c0_i32 = arith.constant 0 : i32
    %c0_i32_0 = arith.constant 0 : i32
    %c0_i32_1 = arith.constant 0 : i32
    return %c0_i32, %c0_i32_0 : i32, i32
  }
  func.func @transform_6(%arg0: i32) -> (i32, i32) {
    %c0_i32 = arith.constant 0 : i32
    %c0_i32_0 = arith.constant 0 : i32
    %c0_i32_1 = arith.constant 0 : i32
    return %c0_i32, %c0_i32_0 : i32, i32
  }
  func.func @transform_7(%arg0: i32) -> (i32, i32) {
    %c0_i32 = arith.constant 0 : i32
    %c0_i32_0 = arith.constant 0 : i32
    %c0_i32_1 = arith.constant 0 : i32
    return %c0_i32, %c0_i32_0 : i32, i32
  }
  func.func @transform_8(%arg0: i32) -> (i32, i32, i32) {
    %c0_i32 = arith.constant 0 : i32
    %c0_i32_0 = arith.constant 0 : i32
    %c0_i32_1 = arith.constant 0 : i32
    return %arg0, %c0_i32, %c0_i32_0 : i32, i32, i32
  }
}

</mosaic_0001>

<bundles_post_ra>
// kernel: tpu_custom_call.1
= control target key start
LH: loop header
LB: loop body
LE: loop exit
PB: predicated region body
PF: predicated region fallthrough
CT: control target
= control target key end

     0   :  { %13 = vsyncpa [#allocation3], 0  ;;  %s1267_s0 = inlined_call_operand.vmem [shape: f32[2,8,32], index: 0, kind: input, shape index: {}]   ;;  %s1268_s1 = inlined_call_operand.vmem [shape: f32[2,8,1], index: 1, kind: input, shape index: {}]   ;;  %s1269_s2 = inlined_call_operand.vmem [shape: f32[32,64], index: 2, kind: input, shape index: {}]   ;;  %s1270_s3 = inlined_call_operand.hbm [shape: f32[8,16], index: 3, kind: input, shape index: {}]   ;;  %s1271_s4 = inlined_call_operand.hbm [shape: f32[5,32], index: 4, kind: input, shape index: {}]   ;;  %s1272_s5 = inlined_call_operand.vmem [shape: bf16[32,64], index: 5, kind: input, shape index: {}]   ;;  %s1273_s6 = inlined_call_operand.vmem [shape: f32[1,64], index: 6, kind: input, shape index: {}]   ;;  %s1274_s7 = inlined_call_operand.vmem [shape: bf16[64,32], index: 7, kind: input, shape index: {}]   ;;  %s1275_s8 = inlined_call_operand.hbm [shape: f32[2,8,32], index: 8, kind: output, shape index: {}]  }
   0x1   :  { %14 = vsyncpa [#allocation6], 0 }
   0x2   :  { %15 = vsyncpa [#allocation4], 0  ;;  %s1018_s27 = smov [#allocation2]   ;;  %s1019_s29 = smov [#allocation5]  }
   0x3   :  { %s28_s28 = sshll.u32 %s1018_s27, 4  ;;  %s38_s30 = sshll.u32 %s1019_s29, 4  ;;  %s29_s28 = int_to_ptr.vmem [resolvable:$true] %s28_s28  ;;  %s39_s30 = int_to_ptr.vmem [resolvable:$true] %s38_s30 }
   0x4   :  { %s946_s11 = scalar_lea.hbm %s1270_s3, 128 }
   0x5   :  { %p947_p0 = scmp.ne.s32.totalorder %s1270_s3, %s946_s11  ;;  %p950_p1 = scmp.lt.u32.totalorder %s946_s11, %s1270_s3 }
   0x7   :  { %p952_p2 = pnand %p950_p1, %p947_p0 }
   0x9   :  { %955 = shalt.err (!%p952_p2)
}
   0xa   :  { %s956_s16 = scalar_lea.vmem %s29_s28, 128  ;;  %p961_p4 = scmp.lt.s32.totalorder %s29_s28, %s29_s28 }
   0xb   :  { %p957_p3 = scmp.ne.s32.totalorder %s29_s28, %s956_s16  ;;  %p962_p5 = scmp.lt.s32.totalorder %s956_s16, %s956_s16 }
   0xd   :  { %p963_p6 = por %p962_p5, %p961_p4 }
   0xf   :  { %p964_p7 = pnand %p963_p6, %p957_p3 }
  0x11   :  { %967 = shalt.err (!%p964_p7)
}
  0x12   :  { %31 = dma.hbm_to_vmem [thread:$0]  %s1270_s3, 128, %s29_s28, [#allocation3]  }
  0x13   :  { %s968_s21 = scalar_lea.hbm %s1271_s4, 128 }
  0x14   :  { %p969_p8 = scmp.ne.s32.totalorder %s1271_s4, %s968_s21  ;;  %p972_p9 = scmp.lt.u32.totalorder %s968_s21, %s1271_s4 }
  0x16   :  { %p974_p10 = pnand %p972_p9, %p969_p8 }
  0x18   :  { %977 = shalt.err (!%p974_p10)
}
  0x19   :  { %s978_s26 = scalar_lea.vmem %s39_s30, 128  ;;  %p983_p12 = scmp.lt.s32.totalorder %s39_s30, %s39_s30 }
  0x1a   :  { %p979_p11 = scmp.ne.s32.totalorder %s39_s30, %s978_s26  ;;  %p984_p13 = scmp.lt.s32.totalorder %s978_s26, %s978_s26 }
  0x1c   :  { %p985_p0 = por %p984_p13, %p983_p12 }
  0x1e   :  { %p986_p1 = pnand %p985_p0, %p979_p11 }
  0x20   :  { %989 = shalt.err (!%p986_p1)
}
  0x21   :  { %41 = dma.hbm_to_vmem [thread:$0]  %s1271_s4, 128, %s39_s30, [#allocation6]  }
  0x22   :  { %1012 = dma.done.wait [#allocation3], 128  }
  0x23   :  { %1013 = vsyncadd [#allocation3], 4294967168 }
  0x24   :  { %1014 = dma.done.wait [#allocation6], 128  }
  0x25   :  { %1015 = vsyncadd [#allocation6], 4294967168  ;;  %v1020_v0 = vmov 0.0|0.0   ;;  %vm1021_vm0 = vmmov 0   ;;  %v1022_v1 = vmov 0.0   ;;  %v55_v2 = vld [vmem:[%s1269_s2] sm:$0xff]  ;;  %v249_v32 = vlaneseq }
  0x26   :  { %895 = vmatprep.subr.bf16.mxu0 %v1020_v0  ;;  %827 = vmatprep.mubr.msk.f32.mxu0 %vm1021_vm0, %v1022_v1  ;;  %v56_v3 = vld [vmem:[%s1269_s2 + $0x8] sm:$0xff]  ;;  %v57_v4 = vld [vmem:[%s1269_s2 + $0x10] sm:$0xff]  ;;  %v58_v6 = vld [vmem:[%s1269_s2 + $0x18] sm:$0xff]  ;;  %vm76_vm1 = vcmask 261120   ;;  %v1023_v9 = vmov 0   ;;  %s1024_s2 = smov 96  }
  0x27   :  { %837 = vmatprep.subr.bf16.mxu1 %v1022_v1  ;;  %841 = vmatprep.mubr.msk.bf16.mxu1 %vm1021_vm0, %v1022_v1  ;;  %v1112_v5 = vpack.c.bf16 %v56_v3, %v55_v2  ;;  %v1118_v7 = vpack.c.bf16 %v58_v6, %v57_v4  ;;  %v74_v8 = vld [vmem:[%s1267_s0] sm:$0xff]  ;;  %v782_v13 = vld [vmem:[%s1268_s1 + $0x8] sm:$0xff]  ;;  %vm154_vm2 = vcmask 130048   ;;  %v1159_v34 = vshrl.u32 %v249_v32, 7  ;;  %v928_v48 = vld [vmem:[%s1274_s7 + $0x10] sm:$0xff]  }
  0x28   :  { %923 = vset.pattern.permute.xlu0 %v1023_v9  ;;  %v75_v12 = vld [vmem:[%s1268_s1] sm:$0xff]  ;;  %v1154_v29 = vld [vmem:[%s1272_s5 + $0x8] sm:$0xff]   ;;  %v929_v49 = vld [vmem:[%s1274_s7 + $0x18] sm:$0xff]   ;;  %vm377_vm4 = vcmask 523264  }
  0x29   :  { %897 = vmatpush3.bf16.msra.mxu0 %v1112_v5  ;;  %v1136_v16 = vld [vmem:[#allocation2] sm:$0xff]  ;;  %v251_v35 = vsub.s32 0, %v1159_v34  ;;  %v1162_v36 = vld [vmem:[#allocation5] sm:$0x1f]  ;;  %v256_v37 = vsub.s32 1, %v1159_v34 }
  0x2a   :  { %898 = vmatprep.subr.bf16.mxu0 %v1020_v0  ;;  %v1148_v28 = vld [vmem:[%s1272_s5] sm:$0xff]   ;;  %v1186_v45 = vld [vmem:[%s1267_s0 + $0x8] sm:$0xff] }
  0x2b   :  { %838 = vmatpush3.bf16.msra.mxu1 %v1148_v28  ;;  %v1166_v38 = vrot.slane %v1162_v36, %v251_v35  ;;  %v1169_v41 = vrot.slane %v1162_v36, %v256_v37  ;;  %v926_v46 = vld [vmem:[%s1274_s7] sm:$0xff]   ;;  %v927_v47 = vld [vmem:[%s1274_s7 + $0x8] sm:$0xff]  }
  0x2c   :  { %839 = vmatprep.subr.bf16.mxu1 %v1022_v1  ;;  %v1212_v50 = vld [vmem:[%s1273_s6] ss:$0 sm:$0xff]  ;;  %s1025_s6 = smov [#allocation7]  }
  0x2d   :  { %900 = vmatpush3.bf16.msra.mxu0 %v1118_v7  ;;  %s757_s7 = sshll.u32 %s1025_s6, 4  ;;  %s758_s7 = int_to_ptr.vmem [resolvable:$true] %s757_s7 }
  0x2e   :  { %901 = vmatprep.subr.bf16.mxu0 %v1020_v0  ;;  %s990_s30 = scalar_lea.vmem %s758_s7, 256  ;;  %p995_p3 = scmp.lt.s32.totalorder %s758_s7, %s758_s7 }
  0x2f   :  { %840 = vmatpush3.bf16.msra.mxu1 %v1154_v29  ;;  %p991_p2 = scmp.ne.s32.totalorder %s758_s7, %s990_s30  ;;  %p996_p4 = scmp.lt.s32.totalorder %s990_s30, %s990_s30 }
  0x30   :  { %828 = vmatmul.mubr.msk.f32.vlgmr.msra.gmra.mrb[0].mxu0 %vm76_vm1, %v74_v8  ;;  %904 = vmatprep.subr.bf16.mxu1 %v1020_v0 }
  0x31   :  { %834 = vmatprep.mubr.msk.f32.mxu0 %vm1021_vm0, %v1022_v1  ;;  %p997_p5 = por %p996_p4, %p995_p3 }
  0x33   :  { %p998_p6 = pnand %p997_p5, %p991_p2 }
 0x103   :  { %v146_v10 = vpop.f32.mrb[0].mxu0 }
 0x104   :  { %151 = vrot.lane.b32.xlu0 %v146_v10, %s1024_s2  ;;  %v829_v11 = vpop.f32.mrb[1].mxu0 }
 0x108   :  { %230 = vperm.xlu0 %923, %v75_v12  }
 0x10c   :  { %599 = vperm.xlu0 %923, %v782_v13  }
 0x176   :  { %v152_v14 = vpop.permute.xlu0 %151 }
 0x177   :  { %v902_v15 = vpack.c.bf16 %v152_v14, %v146_v10 }
 0x179   :  { %903 = vmatpush3.bf16.msra.mxu0 %v902_v15 }
 0x17a   :  { %845 = vmatprep.subr.bf16.mxu0 %v1022_v1 }
 0x17c   :  { %835 = vmatmul.mubr.msk.f32.vlgmr.msra.gmra.mrb[2].mxu0 %vm154_vm2, %v1136_v16 }
 0x17d   :  { %853 = vmatprep.mubr.msk.bf16.mxu0 %vm1021_vm0, %v1022_v1  ;;  %846 = vmatpush3.bf16.msra.mxu0 %v926_v46 }
 0x17e   :  { %847 = vmatprep.subr.bf16.mxu0 %v1022_v1 }
 0x181   :  { %848 = vmatpush3.bf16.msra.mxu0 %v927_v47 }
 0x182   :  { %849 = vmatprep.subr.bf16.mxu0 %v1022_v1 }
 0x185   :  { %850 = vmatpush3.bf16.msra.mxu0 %v928_v48 }
 0x186   :  { %851 = vmatprep.subr.bf16.mxu0 %v1022_v1 }
 0x187   :  { %v231_v17 = vpop.permute.xlu0 %230 }
 0x189   :  { %852 = vmatpush3.bf16.msra.mxu0 %v929_v49 }
 0x18a   :  { %875 = vmatprep.subr.bf16.mxu0 %v1022_v1 }
 0x24f   :  { %v224_v18 = vpop.f32.mrb[2].mxu0 }
 0x250   :  { %v233_v19 = vmul.f32 %v231_v17, %v224_v18  ;;  %v836_v20 = vpop.f32.mrb[3].mxu0 }
 0x252   :  { %v234_v21 = vadd.f32 %v233_v19, %v74_v8 }
 0x254   :  { %v235_v22 = vsel %vm76_vm1, %v234_v21, 0.0 }
 0x255   :  { %236 = vadd.xlane.f32.xlu1 %v235_v22 }
 0x2e2   :  { %v237_v23 = vpop.xlane.xlu1 %236 }
 0x2e3   :  { %v239_v24 = vmul.f32 0.03125, %v237_v23 }
 0x2e5   :  { %v240_v25 = vsub.f32 %v234_v21, %v239_v24 }
 0x2e7   :  { %v241_v26 = vmul.f32 %v240_v25, %v240_v25 }
 0x2e9   :  { %v242_v27 = vsel %vm76_vm1, %v241_v26, 0.0 }
 0x2ea   :  { %243 = vadd.xlane.f32.xlu1 %v242_v27 }
 0x377   :  { %v244_v30 = vpop.xlane.xlu1 %243 }
 0x378   :  { %v245_v31 = vmul.f32 0.03125, %v244_v30 }
 0x37a   :  { %v246_v33 = vadd.f32 1e-05, %v245_v31 }
 0x37c   :  { %930 = vrsqrt.f32 %v246_v33 }
 0x386   :  { %v931_v39 = vpop.eup %930 }
 0x387   :  { %v248_v40 = vmul.f32 %v931_v39, %v240_v25 }
 0x389   :  { %v253_v42 = vmul.f32 %v1166_v38, %v248_v40 }
 0x38b   :  { %v1173_v43 = vadd.f32 %v1169_v41, %v253_v42 }
 0x38d   :  { %v259_v44 = vpack.c.bf16 %v1173_v43, %v1173_v43 }
 0x38f   :  { %842 = vmatmul.mubr.msk.bf16.vlgmr.msra.gmra.mrb[0].mxu1 %vm76_vm1, %v259_v44 }
 0x390   :  { %906 = vmatpush3.bf16.msra.mxu1 %v1112_v5  ;;  %865 = vmatprep.mubr.msk.f32.mxu1 %vm1021_vm0, %v1022_v1 }
 0x391   :  { %907 = vmatprep.subr.bf16.mxu1 %v1020_v0 }
 0x394   :  { %909 = vmatpush3.bf16.msra.mxu1 %v1118_v7 }
 0x395   :  { %910 = vmatprep.subr.bf16.mxu1 %v1020_v0 }
 0x397   :  { %866 = vmatmul.mubr.msk.f32.vlgmr.msra.gmra.mrb[4].mxu1 %vm76_vm1, %v1186_v45 }
 0x398   :  { %872 = vmatprep.mubr.msk.f32.mxu1 %vm1021_vm0, %v1022_v1 }
 0x462   :  { %v315_v51 = vpop.f32.mrb[0].mxu1 }
 0x463   :  { %v316_v52 = vadd.f32 %v1212_v50, %v315_v51  ;;  %v843_v53 = vpop.f32.mrb[1].mxu1 }
 0x464   :  { %v318_v54 = vpop.f32.mrb[2].mxu1 }
 0x465   :  { %v322_v55 = vmul.f32 0.70710677, %v316_v52  ;;  %v844_v56 = vpop.f32.mrb[3].mxu1  ;;  %v321_v18 = vmul.f32 0.5, %v316_v52 }
 0x467   :  { %v323_v57 = vand.u32 2147483647, %v322_v55  ;;  %vm343_vm3 = vcmp.lt.f32.partialorder %v322_v55, 0.0 }
 0x469   :  { %v324_v58 = vmul.f32 0.3275911, %v323_v57  ;;  %v337_v62 = vmul.f32 %v323_v57, %v323_v57 }
 0x46a   :  { %v519_v59 = vpop.f32.mrb[4].mxu1 }
 0x46b   :  { %v325_v60 = vadd.f32 1.0, %v324_v58  ;;  %524 = vrot.lane.b32.xlu1 %v519_v59, %s1024_s2  ;;  %v867_v61 = vpop.f32.mrb[5].mxu1  ;;  %v338_v0 = vsub.f32 0.0, %v337_v62 }
 0x46d   :  { %932 = vrcp.f32 %v325_v60  ;;  %v339_v4 = vmul.f32 1.442695, %v338_v0 }
 0x46f   :  { %934 = vpow2.f32 %v339_v4 }
 0x477   :  { %v933_v63 = vpop.eup %932 }
 0x478   :  { %v328_v2 = vmul.f32 1.0614054, %v933_v63 }
 0x479   :  { %v935_v12 = vpop.eup %934 }
 0x47a   :  { %v329_v3 = vadd.f32 -1.4531521, %v328_v2 }
 0x47c   :  { %v330_v5 = vmul.f32 %v933_v63, %v329_v3 }
 0x47e   :  { %v331_v6 = vadd.f32 1.4214138, %v330_v5 }
 0x480   :  { %v332_v7 = vmul.f32 %v933_v63, %v331_v6 }
 0x482   :  { %v333_v8 = vadd.f32 -0.28449672, %v332_v7 }
 0x484   :  { %v334_v9 = vmul.f32 %v933_v63, %v333_v8 }
 0x486   :  { %v335_v10 = vadd.f32 0.2548296, %v334_v9 }
 0x488   :  { %v336_v11 = vmul.f32 %v933_v63, %v335_v10 }
 0x48a   :  { %v341_v13 = vmul.f32 %v935_v12, %v336_v11 }
 0x48c   :  { %v342_v14 = vsub.f32 1.0, %v341_v13 }
 0x48e   :  { %v344_v15 = vsub.f32 0.0, %v342_v14 }
 0x490   :  { %v345_v17 = vsel %vm343_vm3, %v344_v15, %v342_v14 }
 0x491   :  { %v346_v19 = vadd.f32 1.0, %v345_v17 }
 0x493   :  { %v347_v20 = vmul.f32 %v346_v19, %v321_v18 }
 0x495   :  { %v348_v21 = vpack.c.bf16 %v347_v20, %v347_v20 }
 0x497   :  { %854 = vmatmul.mubr.msk.bf16.vlgmr.msra.gmra.mrb[4].mxu0 %vm377_vm4, %v348_v21 }
 0x498   :  { %876 = vmatpush3.bf16.msra.mxu0 %v1148_v28  ;;  %879 = vmatprep.mubr.msk.bf16.mxu0 %vm1021_vm0, %v1022_v1  ;;  %v351_v28 = vsub.s32 4, %v1159_v34 }
 0x499   :  { %877 = vmatprep.subr.bf16.mxu0 %v1022_v1 }
 0x49c   :  { %878 = vmatpush3.bf16.msra.mxu0 %v1154_v29  ;;  %v600_v29 = vpop.permute.xlu0 %599 }
 0x4dd   :  { %v525_v22 = vpop.permute.xlu1 %524 }
 0x4de   :  { %v911_v23 = vpack.c.bf16 %v525_v22, %v519_v59 }
 0x4e0   :  { %912 = vmatpush3.bf16.msra.mxu1 %v911_v23 }
 0x4e1   :  { %883 = vmatprep.subr.bf16.mxu1 %v1022_v1 }
 0x4e3   :  { %873 = vmatmul.mubr.msk.f32.vlgmr.msra.gmra.mrb[6].mxu1 %vm154_vm2, %v1136_v16  ;;  %v1232_v16 = vrot.slane %v1162_v36, %v351_v28 }
 0x4e4   :  { %884 = vmatpush3.bf16.msra.mxu1 %v926_v46  ;;  %891 = vmatprep.mubr.msk.bf16.mxu1 %vm1021_vm0, %v1022_v1 }
 0x4e5   :  { %885 = vmatprep.subr.bf16.mxu1 %v1022_v1 }
 0x4e8   :  { %886 = vmatpush3.bf16.msra.mxu1 %v927_v47 }
 0x4e9   :  { %887 = vmatprep.subr.bf16.mxu1 %v1022_v1 }
 0x4ec   :  { %888 = vmatpush3.bf16.msra.mxu1 %v928_v48 }
 0x4ed   :  { %889 = vmatprep.subr.bf16.mxu1 %v1022_v1 }
 0x4f0   :  { %890 = vmatpush3.bf16.msra.mxu1 %v929_v49 }
 0x56a   :  { %v415_v24 = vpop.f32.mrb[4].mxu0 }
 0x56b   :  { %v855_v25 = vpop.f32.mrb[5].mxu0  ;;  %v416_v31 = vadd.f32 %v415_v24, %v1232_v16 }
 0x56c   :  { %v418_v26 = vpop.f32.mrb[6].mxu0 }
 0x56d   :  { %v856_v27 = vpop.f32.mrb[7].mxu0  ;;  %v421_v37 = vadd.f32 %v416_v31, %v1173_v43 }
 0x56f   :  { %v422_v39 = vsel %vm76_vm1, %v421_v37, 0.0 }
 0x5b6   :  { %v593_v30 = vpop.f32.mrb[6].mxu1 }
 0x5b7   :  { %v602_v32 = vmul.f32 %v600_v29, %v593_v30  ;;  %v874_v33 = vpop.f32.mrb[7].mxu1 }
 0x5b9   :  { %v603_v35 = vadd.f32 %v1186_v45, %v602_v32 }
 0x5bb   :  { %v604_v1 = vsel %vm76_vm1, %v603_v35, 0.0 }
 0x5bc   :  { %605 = vadd.xlane.f32.xlu0 %v604_v1 }
 0x5c0   :  { %423 = vadd.xlane.f32.xlu0 %v422_v39 }
 0x649   :  { %v606_v40 = vpop.xlane.xlu0 %605 }
 0x64a   :  { %v607_v42 = vmul.f32 0.03125, %v606_v40 }
 0x64c   :  { %v608_v44 = vsub.f32 %v603_v35, %v607_v42 }
 0x64d   :  { %v424_v21 = vpop.xlane.xlu0 %423 }
 0x64e   :  { %v609_v46 = vmul.f32 %v608_v44, %v608_v44  ;;  %v425_v22 = vmul.f32 0.03125, %v424_v21 }
 0x650   :  { %v610_v47 = vsel %vm76_vm1, %v609_v46, 0.0  ;;  %v426_v24 = vsub.f32 %v421_v37, %v425_v22  ;;  %v442_v46 = vsub.s32 3, %v1159_v34 }
 0x651   :  { %611 = vadd.xlane.f32.xlu1 %v610_v47 }
 0x652   :  { %v427_v31 = vmul.f32 %v426_v24, %v426_v24 }
 0x654   :  { %v428_v32 = vsel %vm76_vm1, %v427_v31, 0.0 }
 0x6de   :  { %v612_v48 = vpop.xlane.xlu1 %611 }
 0x6df   :  { %v613_v49 = vmul.f32 0.03125, %v612_v48 }
 0x6e1   :  { %v614_v51 = vadd.f32 1e-05, %v613_v49 }
 0x6e3   :  { %936 = vrsqrt.f32 %v614_v51  ;;  %v443_v51 = vrot.slane %v1162_v36, %v442_v46 }
 0x6ed   :  { %v937_v45 = vpop.eup %936 }
 0x6ee   :  { %v616_v52 = vmul.f32 %v937_v45, %v608_v44  ;;  %v437_v44 = vsub.s32 2, %v1159_v34 }
 0x6f0   :  { %v617_v53 = vmul.f32 %v616_v52, %v1166_v38  ;;  %v438_v47 = vrot.slane %v1162_v36, %v437_v44 }
 0x6f2   :  { %v618_v43 = vadd.f32 %v617_v53, %v1169_v41 }
 0x6f4   :  { %v619_v54 = vpack.c.bf16 %v618_v43, %v618_v43 }
 0x6f6   :  { %880 = vmatmul.mubr.msk.bf16.vlgmr.msra.gmra.mrb[8].mxu0 %vm76_vm1, %v619_v54 }
 0x7c9   :  { %v657_v55 = vpop.f32.mrb[8].mxu0 }
 0x7ca   :  { %v658_v56 = vadd.f32 %v1212_v50, %v657_v55  ;;  %v881_v57 = vpop.f32.mrb[9].mxu0 }
 0x7cb   :  { %v660_v58 = vpop.f32.mrb[10].mxu0 }
 0x7cc   :  { %v664_v59 = vmul.f32 0.70710677, %v658_v56  ;;  %v882_v60 = vpop.f32.mrb[11].mxu0  ;;  %v663_v17 = vmul.f32 0.5, %v658_v56 }
 0x7ce   :  { %v665_v61 = vand.u32 2147483647, %v664_v59  ;;  %vm685_vm5 = vcmp.lt.f32.partialorder %v664_v59, 0.0 }
 0x7d0   :  { %v666_v62 = vmul.f32 0.3275911, %v665_v61  ;;  %v679_v0 = vmul.f32 %v665_v61, %v665_v61 }
 0x7d2   :  { %v667_v63 = vadd.f32 1.0, %v666_v62  ;;  %v680_v3 = vsub.f32 0.0, %v679_v0 }
 0x7d4   :  { %938 = vrcp.f32 %v667_v63  ;;  %v681_v41 = vmul.f32 1.442695, %v680_v3 }
 0x7d6   :  { %940 = vpow2.f32 %v681_v41 }
 0x7de   :  { %v939_v2 = vpop.eup %938 }
 0x7df   :  { %v670_v38 = vmul.f32 1.0614054, %v939_v2 }
 0x7e0   :  { %v941_v11 = vpop.eup %940 }
 0x7e1   :  { %v671_v4 = vadd.f32 -1.4531521, %v670_v38 }
 0x7e3   :  { %v672_v5 = vmul.f32 %v939_v2, %v671_v4 }
 0x7e5   :  { %v673_v6 = vadd.f32 1.4214138, %v672_v5 }
 0x7e7   :  { %v674_v7 = vmul.f32 %v939_v2, %v673_v6 }
 0x7e9   :  { %v675_v8 = vadd.f32 -0.28449672, %v674_v7 }
 0x7eb   :  { %v676_v50 = vmul.f32 %v939_v2, %v675_v8 }
 0x7ed   :  { %v677_v9 = vadd.f32 0.2548296, %v676_v50 }
 0x7ef   :  { %v678_v10 = vmul.f32 %v939_v2, %v677_v9 }
 0x7f1   :  { %v683_v12 = vmul.f32 %v941_v11, %v678_v10 }
 0x7f3   :  { %v684_v13 = vsub.f32 1.0, %v683_v12 }
 0x7f5   :  { %v686_v14 = vsub.f32 0.0, %v684_v13 }
 0x7f7   :  { %v687_v15 = vsel %vm685_vm5, %v686_v14, %v684_v13 }
 0x7f8   :  { %v688_v18 = vadd.f32 1.0, %v687_v15 }
 0x7fa   :  { %v689_v19 = vmul.f32 %v688_v18, %v663_v17 }
 0x7fc   :  { %v690_v20 = vpack.c.bf16 %v689_v19, %v689_v19 }
 0x7fe   :  { %892 = vmatmul.mubr.msk.bf16.vlgmr.msra.gmra.mrb[8].mxu1 %vm377_vm4, %v690_v20 }
 0x8d1   :  { %v728_v23 = vpop.f32.mrb[8].mxu1 }
 0x8d2   :  { %v729_v25 = vadd.f32 %v728_v23, %v1232_v16  ;;  %v893_v26 = vpop.f32.mrb[9].mxu1 }
 0x8d3   :  { %v731_v27 = vpop.f32.mrb[10].mxu1 }
 0x8d4   :  { %v894_v28 = vpop.f32.mrb[11].mxu1  ;;  %v734_v29 = vadd.f32 %v729_v25, %v618_v43 }
 0x8d6   :  { %v735_v30 = vsel %vm76_vm1, %v734_v29, 0.0 }
 0x8d7   :  { %736 = vadd.xlane.f32.xlu0 %v735_v30 }
 0x8db   :  { %429 = vadd.xlane.f32.xlu0 %v428_v32 }
 0x964   :  { %v737_v33 = vpop.xlane.xlu0 %736 }
 0x965   :  { %v738_v35 = vmul.f32 0.03125, %v737_v33 }
 0x967   :  { %v739_v1 = vsub.f32 %v734_v29, %v738_v35 }
 0x968   :  { %v430_v39 = vpop.xlane.xlu0 %429 }
 0x969   :  { %v431_v40 = vmul.f32 0.03125, %v430_v39  ;;  %v740_v42 = vmul.f32 %v739_v1, %v739_v1 }
 0x96b   :  { %v432_v37 = vadd.f32 1e-05, %v431_v40  ;;  %v741_v16 = vsel %vm76_vm1, %v740_v42, 0.0 }
 0x96c   :  { %742 = vadd.xlane.f32.xlu0 %v741_v16 }
 0x96d   :  { %942 = vrsqrt.f32 %v432_v37 }
 0x977   :  { %v943_v48 = vpop.eup %942 }
 0x978   :  { %v434_v49 = vmul.f32 %v943_v48, %v426_v24 }
 0x97a   :  { %v439_v45 = vmul.f32 %v438_v47, %v434_v49 }
 0x97c   :  { %v444_v52 = vadd.f32 %v443_v51, %v439_v45 }
 0x97e   :  { %445 = vst.msk [vmem:[#allocation7] sm:$0xff] %vm76_vm1, %v444_v52 }
 0x9f9   :  { %v743_v53 = vpop.xlane.xlu0 %742 }
 0x9fa   :  { %v744_v43 = vmul.f32 0.03125, %v743_v53 }
 0x9fc   :  { %v745_v54 = vadd.f32 1e-05, %v744_v43 }
 0x9fe   :  { %944 = vrsqrt.f32 %v745_v54 }
 0xa08   :  { %v945_v55 = vpop.eup %944 }
 0xa09   :  { %v747_v56 = vmul.f32 %v945_v55, %v739_v1 }
 0xa0b   :  { %v748_v57 = vmul.f32 %v747_v56, %v438_v47 }
 0xa0d   :  { %v749_v34 = vadd.f32 %v748_v57, %v443_v51 }
 0xa0f   :  { %751 = vst.msk [vmem:[#allocation7 + $0x8] sm:$0xff] %vm76_vm1, %v749_v34 }
 0xa10   :  { %1001 = shalt.err (!%p998_p6)
}
 0xa11   :  { %s1002_s11 = scalar_lea.hbm %s1275_s8, 256 }
 0xa12   :  { %p1003_p7 = scmp.ne.s32.totalorder %s1275_s8, %s1002_s11  ;;  %p1006_p8 = scmp.lt.u32.totalorder %s1002_s11, %s1275_s8 }
 0xa14   :  { %p1008_p9 = pnand %p1006_p8, %p1003_p7 }
 0xa16   :  { %1011 = shalt.err (!%p1008_p9)
}
 0xa17   :  { %s1026_s15 = smov 128   ;;  %s1027_s16 = smov 8  }
 0xa18   :  { %763 = dma.vmem_to_hbm [thread:$0]  %s758_s7, 256, %s1275_s8, [#allocation4], %s1026_s15, %s1026_s15, %s1027_s16  }
 0xa19   :  { %1016 = dma.done.wait [#allocation4], 256  }
 0xa1a   :  { %1017 = vsyncadd [#allocation4], 4294967040 }
 0xa1b   :  { %767 = vsyncpa [#allocation3], 1 }
 0xa1c   :  { %768 = vsyncpa [#allocation6], 1 }
 0xa1d   :  { %769 = vsyncpa [#allocation4], 1 }

</bundles_post_ra>
